<compile_context>
chip_gen: v5e
topology: v5e:2x2
jax: 0.10.0
libtpu: 0.0.40
codegen_flags: <defaults>
</compile_context>

<pallas_src>
import jax
import jax.numpy as jnp
import numpy as np
from jax import lax
from jax.experimental import pallas as pl
from jax.experimental.pallas import tpu as pltpu


def _channel_attention_kernel(x_ref, w1_ref, b1_ref, w2_ref, b2x2_ref, o_ref):
    # x_ref / o_ref: (1, C, HW) block, HW lane-dense.  Weights/biases are f32.
    xf = x_ref[...].astype(jnp.float32)                               # (1, C, HW)

    # Global average / max pooling over the spatial axis = lane reductions.
    avg_p = jnp.mean(xf, axis=-1)                                     # (1, C)
    max_p = jnp.max(xf, axis=-1)                                      # (1, C)

    # Shared MLP; avg & max branches stacked -> one MXU push for Linear #1.
    pooled = jnp.concatenate([avg_p, max_p], axis=0)                  # (2, C)
    h = jnp.maximum(
        jnp.dot(pooled, w1_ref[...], preferred_element_type=jnp.float32)
        + b1_ref[...], 0.0)                                           # (2, Cr)

    # Linear #2 is linear: sum branches *before* it (single matmul, bias*2).
    h_sum = h[0:1, :] + h[1:2, :]                                     # (1, Cr)
    y = (jnp.dot(h_sum, w2_ref[...], preferred_element_type=jnp.float32)
         + b2x2_ref[...])                                             # (1, C)
    attn = jax.nn.sigmoid(y)                                          # (1, C)

    # Re-load x from VMEM for the scale (don't hold it live across the MLP).
    # TODO(synk): for C >= 256 the attn[:, :, None] lane->sublane relayout is
    # an XLU transpose on the scale phase's critical path; stage attn through
    # a (1, C, 1) VMEM scratch and broadcast with a stride-0 lane read instead.
    o_ref[...] = (x_ref[...].astype(jnp.float32)
                  * attn[:, :, None]).astype(o_ref.dtype)


def channel_attention_pallas(x_nchw, w1, b1, w2, b2):
    """x_nchw: (B, C, H, W) f32/bf16; w1: (Cr, C); b1: (Cr,); w2: (C, Cr); b2: (C,)."""
    B, C, H, W = x_nchw.shape
    Cr = w1.shape[0]
    HW = H * W

    # NCHW -> (B, C, H*W) is a free reshape (spatial dims already contiguous
    # and last); HW sits on the lane axis, C on sublanes.
    x_flat = x_nchw.reshape(B, C, HW)
    w1_k = w1.T.astype(jnp.float32)                    # (C, Cr)
    b1_k = b1.reshape(1, Cr).astype(jnp.float32)       # (1, Cr)
    w2_k = w2.T.astype(jnp.float32)                    # (Cr, C)
    b2_k = (2.0 * b2).reshape(1, C).astype(jnp.float32)  # branches summed pre-Linear#2

    # Per-step VMEM: double-buffered x block + double-buffered out block
    # + resident weights, with slack.  Clamp to [32 MiB, 64 MiB] so the limit
    # is raised above v5e's 16 MiB default but stays inside v7x physical VMEM.
    blk_bytes = C * HW * x_flat.dtype.itemsize
    w_bytes = 4 * (C * Cr + Cr + Cr * C + C)
    vmem_limit = int(min(max(4 * blk_bytes + w_bytes + (4 << 20), 32 << 20),
                         64 << 20))

    grid_spec = pltpu.PrefetchScalarGridSpec(
        num_scalar_prefetch=0,
        grid=(B,),
        in_specs=[
            pl.BlockSpec((1, C, HW), lambda b: (b, 0, 0)),   # x: one batch row/step
            pl.BlockSpec((C, Cr), lambda b: (0, 0)),          # W1 (resident)
            pl.BlockSpec((1, Cr), lambda b: (0, 0)),          # b1
            pl.BlockSpec((Cr, C), lambda b: (0, 0)),          # W2
            pl.BlockSpec((1, C), lambda b: (0, 0)),           # 2*b2
        ],
        out_specs=pl.BlockSpec((1, C, HW), lambda b: (b, 0, 0)),
    )

    out_flat = pl.pallas_call(
        _channel_attention_kernel,
        out_shape=jax.ShapeDtypeStruct((B, C, HW), x_flat.dtype),
        grid_spec=grid_spec,
        compiler_params=pltpu.CompilerParams(
            dimension_semantics=("parallel",),
            vmem_limit_bytes=vmem_limit),
    )(x_flat, w1_k, b1_k, w2_k, b2_k)

    return out_flat.reshape(B, C, H, W)


def channel_attention_ref(x, w1, b1, w2, b2):
    """Pure-JAX reference matching the PyTorch module."""
    avg = x.mean(axis=(2, 3))
    mx = x.max(axis=(2, 3))

    def mlp(v):
        h = jnp.maximum(
            jnp.dot(v, w1.T, precision=lax.Precision.HIGHEST) + b1, 0.0)
        return jnp.dot(h, w2.T, precision=lax.Precision.HIGHEST) + b2

    attn = jax.nn.sigmoid(mlp(avg) + mlp(mx))
    return x * attn[:, :, None, None]


if __name__ == "__main__":
    B, C, H, W = 2, 32, 16, 16
    reduction = 4                  # hidden = C // reduction = 8
    Cr = C // reduction

    key = jax.random.PRNGKey(0)
    ks = jax.random.split(key, 5)
    x = jax.random.normal(ks[0], (B, C, H, W), jnp.float32)
    w1 = 0.2 * jax.random.normal(ks[1], (Cr, C), jnp.float32)   # Linear C -> Cr
    b1 = 0.1 * jax.random.normal(ks[2], (Cr,), jnp.float32)
    w2 = 0.2 * jax.random.normal(ks[3], (C, Cr), jnp.float32)   # Linear Cr -> C
    b2 = 0.1 * jax.random.normal(ks[4], (C,), jnp.float32)

    # f32 path (tight tolerance).
    out = jax.block_until_ready(channel_attention_pallas(x, w1, b1, w2, b2))
    ref = jax.block_until_ready(channel_attention_ref(x, w1, b1, w2, b2))
    assert out.shape == (B, C, H, W) and out.dtype == jnp.float32
    np.testing.assert_allclose(np.asarray(out), np.asarray(ref),
                               rtol=1e-4, atol=1e-5)

    # bf16 I/O path (half the HBM traffic); arithmetic stays f32 in-kernel.
    x16 = x.astype(jnp.bfloat16)
    out16 = jax.block_until_ready(channel_attention_pallas(x16, w1, b1, w2, b2))
    ref16 = jax.block_until_ready(
        channel_attention_ref(x16.astype(jnp.float32), w1, b1, w2, b2))
    assert out16.dtype == jnp.bfloat16
    np.testing.assert_allclose(np.asarray(out16).astype(np.float32),
                               np.asarray(ref16), rtol=2e-2, atol=2e-2)

    print("KERNEL_OK")
</pallas_src>

<mosaic_0001>
module attributes {stable_mosaic.version = 11 : i64} {
  func.func @_channel_attention_kernel(%arg0: i32, %arg1: memref<1x32x256xf32, #tpu.memory_space<vmem>>, %arg2: memref<32x8xf32, #tpu.memory_space<vmem>>, %arg3: memref<1x8xf32, #tpu.memory_space<vmem>>, %arg4: memref<8x32xf32, #tpu.memory_space<vmem>>, %arg5: memref<1x32xf32, #tpu.memory_space<vmem>>, %arg6: memref<1x32x256xf32, #tpu.memory_space<vmem>>) attributes {dimension_semantics = [#tpu.dimension_semantics<parallel>], iteration_bounds = array<i64: 2>, scalar_prefetch = 0 : i64, scratch_operands = 0 : i64, tpu.core_type = #tpu.core_type<tc>, window_params = [{transform_indices = @transform_0, window_bounds = array<i64: 1, 32, 256>}, {pipeline_mode = #tpu.pipeline_mode<synchronous>, transform_indices = @transform_1, window_bounds = array<i64: 32, 8>}, {pipeline_mode = #tpu.pipeline_mode<synchronous>, transform_indices = @transform_2, window_bounds = array<i64: 1, 8>}, {pipeline_mode = #tpu.pipeline_mode<synchronous>, transform_indices = @transform_3, window_bounds = array<i64: 8, 32>}, {pipeline_mode = #tpu.pipeline_mode<synchronous>, transform_indices = @transform_4, window_bounds = array<i64: 1, 32>}, {transform_indices = @transform_5, window_bounds = array<i64: 1, 32, 256>}]} {
    %c0 = arith.constant 0 : index
    %c0_0 = arith.constant 0 : index
    %c0_1 = arith.constant 0 : index
    %0 = vector.load %arg1[%c0, %c0_0, %c0_1] : memref<1x32x256xf32, #tpu.memory_space<vmem>>, vector<1x32x256xf32>
    %cst = arith.constant dense<0.000000e+00> : vector<1x32xf32>
    %1 = vector.multi_reduction <add>, %0, %cst [2] : vector<1x32x256xf32> to vector<1x32xf32>
    %cst_2 = arith.constant 2.560000e+02 : f32
    %2 = vector.broadcast %cst_2 : f32 to vector<1x32xf32>
    %3 = arith.divf %1, %2 : vector<1x32xf32>
    %cst_3 = arith.constant dense<0xFF800000> : vector<1x32xf32>
    %4 = vector.multi_reduction <maximumf>, %0, %cst_3 [2] : vector<1x32x256xf32> to vector<1x32xf32>
    %5 = tpu.concatenate %3, %4 in 0 : vector<1x32xf32>, vector<1x32xf32> -> vector<2x32xf32>
    %c0_4 = arith.constant 0 : index
    %c0_5 = arith.constant 0 : index
    %6 = vector.load %arg2[%c0_4, %c0_5] : memref<32x8xf32, #tpu.memory_space<vmem>>, vector<32x8xf32>
    %cst_6 = arith.constant dense<0.000000e+00> : vector<2x8xf32>
    %7 = tpu.matmul %5, %6, %cst_6 {dimension_numbers = #tpu.dot_dimension_numbers<[1], [0], [0], [1], [0, 0, 1, 1], [], []>} : vector<2x32xf32>, vector<32x8xf32>, vector<2x8xf32> -> vector<2x8xf32>
    %c0_7 = arith.constant 0 : index
    %c0_8 = arith.constant 0 : index
    %8 = vector.load %arg3[%c0_7, %c0_8] : memref<1x8xf32, #tpu.memory_space<vmem>>, vector<1x8xf32>
    %9 = vector.broadcast %8 : vector<1x8xf32> to vector<2x8xf32>
    %10 = arith.addf %7, %9 : vector<2x8xf32>
    %cst_9 = arith.constant 0.000000e+00 : f32
    %11 = vector.broadcast %cst_9 : f32 to vector<2x8xf32>
    %12 = arith.maximumf %10, %11 : vector<2x8xf32>
    %13 = vector.extract_strided_slice %12 {offsets = [0, 0], sizes = [1, 8], strides = [1, 1]} : vector<2x8xf32> to vector<1x8xf32>
    %14 = vector.extract_strided_slice %12 {offsets = [1, 0], sizes = [1, 8], strides = [1, 1]} : vector<2x8xf32> to vector<1x8xf32>
    %15 = arith.addf %13, %14 : vector<1x8xf32>
    %c0_10 = arith.constant 0 : index
    %c0_11 = arith.constant 0 : index
    %16 = vector.load %arg4[%c0_10, %c0_11] : memref<8x32xf32, #tpu.memory_space<vmem>>, vector<8x32xf32>
    %cst_12 = arith.constant dense<0.000000e+00> : vector<1x32xf32>
    %17 = tpu.matmul %15, %16, %cst_12 {dimension_numbers = #tpu.dot_dimension_numbers<[1], [0], [0], [1], [0, 0, 1, 1], [], []>} : vector<1x8xf32>, vector<8x32xf32>, vector<1x32xf32> -> vector<1x32xf32>
    %c0_13 = arith.constant 0 : index
    %c0_14 = arith.constant 0 : index
    %18 = vector.load %arg5[%c0_13, %c0_14] : memref<1x32xf32, #tpu.memory_space<vmem>>, vector<1x32xf32>
    %19 = arith.addf %17, %18 : vector<1x32xf32>
    %20 = arith.negf %19 : vector<1x32xf32>
    %21 = math.exp %20 : vector<1x32xf32>
    %cst_15 = arith.constant 1.000000e+00 : f32
    %22 = vector.broadcast %cst_15 : f32 to vector<1x32xf32>
    %23 = arith.addf %22, %21 : vector<1x32xf32>
    %24 = arith.divf %22, %23 : vector<1x32xf32>
    %c0_16 = arith.constant 0 : index
    %c0_17 = arith.constant 0 : index
    %c0_18 = arith.constant 0 : index
    %25 = vector.load %arg1[%c0_16, %c0_17, %c0_18] : memref<1x32x256xf32, #tpu.memory_space<vmem>>, vector<1x32x256xf32>
    %26 = vector.shape_cast %24 : vector<1x32xf32> to vector<1x32x1xf32>
    %27 = vector.broadcast %26 : vector<1x32x1xf32> to vector<1x32x256xf32>
    %28 = arith.mulf %25, %27 : vector<1x32x256xf32>
    %c0_19 = arith.constant 0 : index
    %c0_20 = arith.constant 0 : index
    %c0_21 = arith.constant 0 : index
    %29 = vector.load %arg6[%c0_19, %c0_20, %c0_21] : memref<1x32x256xf32, #tpu.memory_space<vmem>>, vector<1x32x256xf32>
    tpu.vector_store %arg6[%c0_19, %c0_20, %c0_21], %28 {strides = array<i32>} : memref<1x32x256xf32, #tpu.memory_space<vmem>>, vector<1x32x256xf32>,
    return
  }
  func.func @transform_0(%arg0: i32) -> (i32, i32, i32) {
    %c0_i32 = arith.constant 0 : i32
    %c0_i32_0 = arith.constant 0 : i32
    %c0_i32_1 = arith.constant 0 : i32
    return %arg0, %c0_i32, %c0_i32_0 : i32, i32, i32
  }
  func.func @transform_1(%arg0: i32) -> (i32, i32) {
    %c0_i32 = arith.constant 0 : i32
    %c0_i32_0 = arith.constant 0 : i32
    %c0_i32_1 = arith.constant 0 : i32
    return %c0_i32, %c0_i32_0 : i32, i32
  }
  func.func @transform_2(%arg0: i32) -> (i32, i32) {
    %c0_i32 = arith.constant 0 : i32
    %c0_i32_0 = arith.constant 0 : i32
    %c0_i32_1 = arith.constant 0 : i32
    return %c0_i32, %c0_i32_0 : i32, i32
  }
  func.func @transform_3(%arg0: i32) -> (i32, i32) {
    %c0_i32 = arith.constant 0 : i32
    %c0_i32_0 = arith.constant 0 : i32
    %c0_i32_1 = arith.constant 0 : i32
    return %c0_i32, %c0_i32_0 : i32, i32
  }
  func.func @transform_4(%arg0: i32) -> (i32, i32) {
    %c0_i32 = arith.constant 0 : i32
    %c0_i32_0 = arith.constant 0 : i32
    %c0_i32_1 = arith.constant 0 : i32
    return %c0_i32, %c0_i32_0 : i32, i32
  }
  func.func @transform_5(%arg0: i32) -> (i32, i32, i32) {
    %c0_i32 = arith.constant 0 : i32
    %c0_i32_0 = arith.constant 0 : i32
    %c0_i32_1 = arith.constant 0 : i32
    return %arg0, %c0_i32, %c0_i32_0 : i32, i32, i32
  }
}

</mosaic_0001>

<bundles_post_ra>
// kernel: tpu_custom_call.1
= control target key start
LH: loop header
LB: loop body
LE: loop exit
PB: predicated region body
PF: predicated region fallthrough
CT: control target
= control target key end

     0   :  { %10 = vsyncpa [#allocation3], 0  ;;  %s941_s0 = inlined_call_operand.hbm [shape: f32[2,32,256], index: 0, kind: input, shape index: {}]   ;;  %s942_s1 = inlined_call_operand.vmem [shape: f32[32,8], index: 1, kind: input, shape index: {}]   ;;  %s943_s2 = inlined_call_operand.vmem [shape: f32[1,8], index: 2, kind: input, shape index: {}]   ;;  %s944_s3 = inlined_call_operand.vmem [shape: f32[8,32], index: 3, kind: input, shape index: {}]   ;;  %s945_s4 = inlined_call_operand.vmem [shape: f32[1,32], index: 4, kind: input, shape index: {}]   ;;  %s946_s5 = inlined_call_operand.hbm [shape: f32[2,32,256], index: 5, kind: output, shape index: {}]  }
   0x1   :  { %12 = vsyncpa [#allocation3 + $0x1], 0 }
   0x2   :  { %13 = vsyncpa [#allocation4], 0 }
   0x3   :  { %15 = vsyncpa [#allocation4 + $0x1], 0  ;;  %s749_s18 = smov 0   ;;  %s751_s19 = smov 0  }
   0x4   :  { %s753_s20 = smov 0   ;;  %s755_s21 = smov 0  }
   0x5 LB: > { %s770_s22 = sadd.s32 4294967295, %s712_s21   ;;  %s534_s23 = sadd.s32 4294967294, %s712_s21   ;;  %s712_s21 = sphi %s755_s21, %s956_s21   ;;  %s708_s20 = sphi %s753_s20, %s955_s20   ;;  %s704_s19 = sphi %s751_s19, %s954_s19   ;;  %s700_s18 = sphi %s749_s18, %s953_s18  }
   0x6   : > { %s774_s24 = sadd.s32 1, %s712_s21   ;;  %s28_s25 = sadd.s32 1, %s708_s20 }
   0x7   : > { %s25_s26 = ssub.s32 %s712_s21, %s774_s24  ;;  %p35_p0 = scmp.ne.s32.totalorder %s708_s20, %s704_s19 }
   0x8   : > { %p26_p1 = scmp.eq.s32.totalorder %s25_s26, 0  ;;  %p36_p2 = scmp.eq.s32.totalorder %s712_s21, 0 }
   0x9   : > { %p41_p3 = scmp.ne.s32.totalorder %s704_s19, %s700_s18  ;;  %p42_p4 = scmp.eq.s32.totalorder %s770_s22, 0 }
   0xa   : > { %s786_s27 = scalar_select %p26_p1, %s708_s20, %s28_s25  }
   0xb   : > { %p788_p5 = por %p36_p2, %p35_p0  ;;  %p792_p6 = por %p42_p4, %p41_p3 }
   0xc   : > { %p149_p7 = scmp.eq.s32.totalorder %s770_s22, 1  ;;  %p155_p8 = scmp.eq.s32.totalorder %s534_s23, 1 }
   0xd   : > { %p565_p10 = scmp.lt.s32.totalorder %s712_s21, 2  ;;  %s187_s7 = sand.u32 1, %s708_s20  }
   0xe   : > { %p799_p11 = por %p149_p7, %p35_p0  ;;  %p803_p12 = por %p155_p8, %p41_p3 }
   0xf   : > { %s551_s8 = sshll.u32 %s712_s21, 6  ;;  %s537_s9 = sshll.u32 %s187_s7, 6 }
  0x10   : > { %s196_s12 = scalar_lea.hbm %s941_s0, %s551_s8  ;;  %s191_s14 = scalar_lea.vmem [#allocation2], %s537_s9 }
  0x11   : > { %s197_s13 = sshll.u32 %s196_s12, 4  ;;  %s199_s15 = sshll.u32 %s191_s14, 4  ;;  %s198_s13 = int_to_ptr.hbm [resolvable:$true] %s197_s13  ;;  %s200_s15 = int_to_ptr.vmem [resolvable:$true] %s199_s15 }
  0x12   : > { %p814_p13 = pnand %p565_p10, %p788_p5  ;;  %p540_p0 = scmp.ge.s32.totalorder %s712_s21, 1 }
  0x13   : > { %p207_p1 = scmp.lt.s32.totalorder %s712_s21, 3  ;;  %s188_s17 = scalar_lea.sflag [#allocation3], %s187_s7 }
  0x14   : > { %s616_s23 = sshra.s32 %s198_s13, 4  ;;  %p620_p3 = pneg %p814_p13  ;;  %s617_s23 = int_to_ptr.hbm [resolvable:$true] %s616_s23 }
  0x15   : > { %s618_s25 = scalar_lea.hbm %s617_s23, 64  ;;  %s623_s28 = scalar_lea.hbm %s941_s0, 128 }
  0x16   : > { %p619_p2 = scmp.ne.s32.totalorder %s617_s23, %s618_s25  ;;  %p624_p5 = scmp.lt.s32.totalorder %s617_s23, %s941_s0 }
  0x17   : > { %p625_p8 = scmp.lt.s32.totalorder %s623_s28, %s618_s25 }
  0x18   : > { %p621_p4 = pnand %p620_p3, %p619_p2 }
  0x19   : > { %p626_p10 = por %p625_p8, %p624_p5 }
  0x1a   : > { %p622_p7 = pneg %p621_p4 }
  0x1c   : > { %p627_p9 = pnand %p626_p10, %p622_p7 }
  0x1e   : > { %630 = shalt.err (!%p627_p9)
}
  0x1f   : > { %s714_s7 = smov 256   ;;  %s715_s11 = smov 16  }
  0x20   : > { %560 = dma.hbm_to_vmem [thread:$0]  (!%p814_p13), %s198_s13, 1024, %s200_s15, %s188_s17, %s714_s7, %s714_s7, %s715_s11  }
  0x21   : > { %p208_p2 = pnand %p540_p0, %p207_p1 }
  0x22   : > { %s835_s12 = sand.u32 (!%p208_p2), 1, %s704_s19  }
  0x23   : > { %211 = sbr.rel (%p208_p2) target bundleno = 597 (0x255), region = 40  ;;  %s541_s14 = sshll.u32 (!%p208_p2), %s835_s12, 6 }
  0x24   : > { %s214_s23 = scalar_lea.sflag (!%p208_p2), [#allocation3], %s835_s12  ;;  %s217_s25 = scalar_lea.vmem (!%p208_p2), [#allocation2], %s541_s14 }
  0x28   : > { %691 = dma.done.wait (%p792_p6), %s214_s23, 1024  }
  0x29   : > { %693 = vsyncadd (%p792_p6), %s214_s23, 4294966272  ;;  %v845_v0 = vld [vmem:[%s217_s25] sm:$0xff]  ;;  %v847_v1 = vld [vmem:[%s217_s25 + $0x8] sm:$0xff]  ;;  %v716_v16 = vmov 256.0   ;;  %v292_v29 = vlaneseq  ;;  %vm297_vm1 = vcmask 130112   ;;  %vm301_vm2 = vcmask 195712  }
  0x2a   : > { %v849_v2 = vld [vmem:[%s217_s25 + $0x20] sm:$0xff]  ;;  %v276_v3 = vmax.f32 %v845_v0, %v847_v1  ;;  %v253_v4 = vadd.f32 %v847_v1, %v845_v0  ;;  %v855_v5 = vld [vmem:[%s217_s25 + $0x28] sm:$0xff]  ;;  %v859_v7 = vld [vmem:[%s217_s25 + $0x10] sm:$0xff]  ;;  %610 = vrcp.f32 %v716_v16  ;;  %vm305_vm3 = vcmask 261312   ;;  %s244_s29 = scalar_lea.vmem [#allocation5], %s541_s14  ;;  %s552_s13 = sshll.u32 %s770_s22, 6 }
  0x2b   : > { %v259_v6 = vadd.f32 %v855_v5, %v849_v2  ;;  %v861_v8 = vld [vmem:[%s217_s25 + $0x18] sm:$0xff]  ;;  %v863_v9 = vld [vmem:[%s217_s25 + $0x30] sm:$0xff]  ;;  %v282_v14 = vmax.f32 %v849_v2, %v855_v5  ;;  %v323_v20 = vld [vmem:[%s942_s1 + $0x8] sm:$0xff]  ;;  %v293_v31 = vand.u32 127, %v292_v29  ;;  %vm320_vm4 = vcmask 1040384   ;;  %s457_s17 = scalar_lea.hbm %s946_s5, %s552_s13  ;;  %s458_s26 = sshll.u32 %s244_s29, 4  ;;  %s459_s26 = int_to_ptr.vmem [resolvable:$true] %s458_s26 }
  0x2c   : > { %277 = vmax.xlane.f32.xlu2 %v276_v3  ;;  %254 = vadd.xlane.f32.xlu0 %v253_v4  ;;  %v865_v10 = vld [vmem:[%s217_s25 + $0x38] sm:$0xff]  ;;  %v279_v11 = vmax.f32 %v859_v7, %v861_v8  ;;  %v256_v12 = vadd.f32 %v861_v8, %v859_v7  ;;  %v324_v18 = vld [vmem:[%s942_s1 + $0x10] sm:$0xff]  ;;  %v322_v21 = vld [vmem:[%s942_s1] sm:$0xff]  ;;  %vm330_vm5 = vcmask 261120   ;;  %vm361_vm6 = vcmask 64512   ;;  %s460_s8 = sshll.u32 %s457_s17, 4  ;;  %s461_s8 = int_to_ptr.hbm [resolvable:$true] %s460_s8 }
  0x2d   : > { %260 = vadd.xlane.f32.xlu1 %v259_v6  ;;  %v262_v13 = vadd.f32 %v865_v10, %v863_v9  ;;  %v285_v15 = vmax.f32 %v863_v9, %v865_v10  ;;  %v325_v17 = vld [vmem:[%s942_s1 + $0x18] sm:$0xff]  ;;  %v295_v34 = vadd.s32 4294967288, %v293_v31  ;;  %v299_v37 = vadd.s32 4294967280, %v293_v31  ;;  %v359_v59 = vld [vmem:[%s944_s3] sm:$0xff]  ;;  %s446_s22 = scalar_lea.sflag [#allocation4], %s835_s12  ;;  %s660_s14 = sshra.s32 %s461_s8, 4  ;;  %s661_s14 = int_to_ptr.hbm [resolvable:$true] %s660_s14 }
  0x2e   : > { %346 = vmatpush.msra.mxu0 %v325_v17  ;;  %v303_v42 = vadd.s32 4294967272, %v293_v31  ;;  %380 = vmatpush.msra.mxu1 %v359_v59  ;;  %v609_v60 = vld [vmem:[%s943_s2] ss:$0 sm:$0xff]  ;;  %v406_v6 = vshrl.u32 %v292_v29, 7  ;;  %s662_s28 = scalar_lea.hbm %s661_s14, 64  ;;  %s666_s7 = scalar_lea.hbm %s946_s5, 128 }
  0x2f   : > { %p663_p6 = scmp.ne.s32.totalorder %s661_s14, %s662_s28  ;;  %p667_p0 = scmp.lt.s32.totalorder %s661_s14, %s946_s5 }
  0x30   : > { %347 = vmatpush.msra.mxu0 %v324_v18  ;;  %v611_v19 = vpop.eup %610  ;;  %604 = vset.pattern.permute.xlu2 %v406_v6  ;;  %p668_p1 = scmp.lt.s32.totalorder %s666_s7, %s662_s28 }
  0x31   : > { %v266_v22 = vmul.f32 256.0, %v611_v19  ;;  %vm270_vm0 = vweird.f32 %v611_v19  ;;  %p664_p9 = pnand %p663_p6, %p799_p11 }
  0x32   : > { %348 = vmatpush.msra.mxu0 %v323_v20  ;;  %p669_p3 = por %p668_p1, %p667_p0 }
  0x33   : > { %v267_v23 = vsub.f32 1.0, %v266_v22  ;;  %p665_p13 = pneg %p664_p9 }
  0x34   : > { %280 = vmax.xlane.f32.xlu2 %v279_v11  ;;  %257 = vadd.xlane.f32.xlu0 %v256_v12  ;;  %v419_v11 = vadd.s32 16, %v406_v6  ;;  %v413_v12 = vadd.s32 8, %v406_v6 }
  0x35   : > { %263 = vadd.xlane.f32.xlu1 %v262_v13  ;;  %349 = vmatpush.msra.mxu0 %v322_v21  ;;  %v268_v24 = vmul.f32 %v611_v19, %v267_v23  ;;  %v360_v13 = vld [vmem:[%s945_s4] sm:$0x1]  ;;  %p670_p4 = pnand %p669_p3, %p665_p13 }
  0x36   : > { %606 = vset.pattern.permute.xlu1 %v419_v11  ;;  %605 = vset.pattern.permute.xlu0 %v413_v12 }
  0x37   : > { %v269_v27 = vadd.f32 %v611_v19, %v268_v24 }
  0x39   : > { %v271_v30 = vsel %vm270_vm0, %v611_v19, %v269_v27 }
  0x3c   : > { %283 = vmax.xlane.f32.xlu0 %v282_v14 }
  0x3d   : > { %286 = vmax.xlane.f32.xlu1 %v285_v15 }
  0x9f   : > { %v255_v25 = vpop.xlane.xlu0 %254  ;;  %v278_v26 = vpop.xlane.xlu2 %277 }
  0xa0   : > { %v261_v28 = vpop.xlane.xlu1 %260  ;;  %v272_v32 = vmul.f32 %v271_v30, %v255_v25  ;;  %v312_v44 = vperm.slane %v278_v26, %v293_v31 }
  0xa1   : > { %v274_v38 = vmul.f32 %v271_v30, %v261_v28 }
  0xa2   : > { %v294_v41 = vperm.slane %v272_v32, %v293_v31 }
  0xa3   : > { %v300_v47 = vperm.slane %v274_v38, %v299_v37 }
  0xa7   : > { %v258_v33 = vpop.xlane.xlu0 %257  ;;  %v281_v39 = vpop.xlane.xlu2 %280 }
  0xa8   : > { %v273_v35 = vmul.f32 %v271_v30, %v258_v33  ;;  %v264_v36 = vpop.xlane.xlu1 %263  ;;  %v313_v45 = vperm.slane %v281_v39, %v295_v34 }
  0xa9   : > { %v275_v43 = vmul.f32 %v271_v30, %v264_v36  ;;  %v425_v30 = vadd.s32 24, %v406_v6 }
  0xaa   : > { %v296_v40 = vperm.slane %v273_v35, %v295_v34  ;;  %v314_v53 = vsel %vm297_vm1, %v313_v45, %v312_v44 }
  0xab   : > { %v304_v48 = vperm.slane %v275_v43, %v303_v42 }
  0xac   : > { %v298_v46 = vsel %vm297_vm1, %v296_v40, %v294_v41 }
  0xad   : > { %v302_v52 = vsel %vm301_vm2, %v300_v47, %v298_v46 }
  0xae   : > { %v306_v56 = vsel %vm305_vm3, %v304_v48, %v302_v52 }
  0xaf   : > { %v284_v49 = vpop.xlane.xlu0 %283 }
  0xb0   : > { %v315_v50 = vperm.slane %v284_v49, %v299_v37  ;;  %v287_v51 = vpop.xlane.xlu1 %286 }
  0xb1   : > { %v317_v54 = vperm.slane %v287_v51, %v303_v42 }
  0xb2   : > { %v316_v55 = vsel %vm301_vm2, %v315_v50, %v314_v53 }
  0xb3   : > { %v318_v57 = vsel %vm305_vm3, %v317_v54, %v316_v55 }
  0xb4   : > { %v321_v58 = vsel %vm320_vm4, %v306_v56, %v318_v57 }
  0xb5   : > { %543 = vmatmul.msk.f32.vlgmr.msra.gmra.mxu0 %vm330_vm5, %v321_v58 }
 0x132   : > { %v351_v61 = vpop.f32.mrf.mxu0 }
 0x133   : > { %v352_v62 = vadd.f32 %v609_v60, %v351_v61 }
 0x135   : > { %v354_v63 = vmax.f32 %v352_v62, 0.0 }
 0x137   : > { %v356_v3 = vrot.slane %v354_v63, 1 }
 0x139   : > { %v358_v4 = vadd.f32 %v356_v3, %v354_v63 }
 0x13b   : > { %544 = vmatmul.msk.f32.vlgmr.msra.gmra.mxu1 %vm361_vm6, %v358_v4 }
 0x1b8   : > { %v382_v14 = vpop.f32.mrf.mxu1 }
 0x1b9   : > { %v383_v15 = vadd.f32 %v382_v14, %v360_v13 }
 0x1bb   : > { %v545_v16 = vmul.f32 -1.442695, %v383_v15 }
 0x1bd   : > { %612 = vpow2.f32 %v545_v16 }
 0x1c3   : > { %v613_v17 = vpop.eup %612 }
 0x1c4   : > { %v388_v18 = vadd.f32 1.0, %v613_v17 }
 0x1c6   : > { %614 = vrcp.f32 %v388_v18  ;;  %v400_v22 = vand.u32 2147483648, %v388_v18  ;;  %v398_v24 = vand.u32 2147483647, %v388_v18  ;;  %vm394_vm8 = vweird.f32 %v388_v18 }
 0x1c8   : > { %v401_v26 = vor.u32 1.1754944e-38, %v400_v22  ;;  %vm399_vm10 = vcmp.eq.f32.partialorder %v398_v24, 8.507059e+37 }
 0x1cc   : > { %v615_v19 = vpop.eup %614 }
 0x1cd   : > { %v390_v20 = vmul.f32 %v615_v19, %v388_v18  ;;  %vm395_vm7 = vweird.f32 %v615_v19 }
 0x1ce   : > { %vm396_vm9 = vmor %vm394_vm8, %vm395_vm7 }
 0x1cf   : > { %v391_v21 = vsub.f32 1.0, %v390_v20 }
 0x1d1   : > { %v392_v23 = vmul.f32 %v615_v19, %v391_v21 }
 0x1d3   : > { %v393_v25 = vadd.f32 %v615_v19, %v392_v23 }
 0x1d5   : > { %v397_v27 = vsel %vm396_vm9, %v615_v19, %v393_v25 }
 0x1d6   : > { %v402_v28 = vsel %vm399_vm10, %v401_v26, %v397_v27 }
 0x1d7   : > { %v404_v29 = vperm.slane %v402_v28, 0 }
 0x1d9   : > { %421 = vperm.xlu1 %606, %v404_v29   ;;  %415 = vperm.xlu0 %605, %v404_v29  }
 0x1da   : > { %409 = vperm.xlu2 %604, %v404_v29  }
 0x1e1   : > { %608 = vset.pattern.permute.xlu0 %v425_v30 }
 0x1e2   : > { %607 = vset.pattern.permute.xlu2 %v425_v30 }
 0x1ea   : > { %427 = vperm.xlu2 %607, %v404_v29  }
 0x234   : > { %v410_v31 = vpop.permute.xlu2 %409 }
 0x235   : > { %v429_v32 = vmul.f32 %v410_v31, %v845_v0  ;;  %v430_v33 = vmul.f32 %v410_v31, %v847_v1 }
 0x237   : > { %437 = vst [vmem:[%s244_s29] sm:$0xff] %v429_v32 }
 0x238   : > { %438 = vst [vmem:[%s244_s29 + $0x8] sm:$0xff] %v430_v33 }
 0x244   : > { %v428_v34 = vpop.permute.xlu2 %427 }
 0x245   : > { %v435_v35 = vmul.f32 %v428_v34, %v863_v9  ;;  %v436_v36 = vmul.f32 %v428_v34, %v865_v10 }
 0x247   : > { %443 = vst [vmem:[%s244_s29 + $0x30] sm:$0xff] %v435_v35 }
 0x248   : > { %444 = vst [vmem:[%s244_s29 + $0x38] sm:$0xff] %v436_v36 }
 0x24b   : > { %v422_v0 = vpop.permute.xlu1 %421  ;;  %v416_v1 = vpop.permute.xlu0 %415 }
 0x24c   : > { %v433_v37 = vmul.f32 %v422_v0, %v849_v2  ;;  %v434_v38 = vmul.f32 %v422_v0, %v855_v5  ;;  %v431_v9 = vmul.f32 %v416_v1, %v859_v7  ;;  %v432_v10 = vmul.f32 %v416_v1, %v861_v8 }
 0x24e   : > { %441 = vst [vmem:[%s244_s29 + $0x20] sm:$0xff] %v433_v37 }
 0x24f   : > { %442 = vst [vmem:[%s244_s29 + $0x28] sm:$0xff] %v434_v38 }
 0x250   : > { %439 = vst [vmem:[%s244_s29 + $0x10] sm:$0xff] %v431_v9 }
 0x251   : > { %440 = vst [vmem:[%s244_s29 + $0x18] sm:$0xff] %v432_v10 }
 0x252   : > { %673 = shalt.err (!%p670_p4)
}
 0x253   : > { %s717_s12 = smov 256   ;;  %s718_s25 = smov 16  }
 0x254   : > { %555 = dma.vmem_to_hbm [thread:$0]  (%p799_p11), %s459_s26, 1024, %s461_s8, %s446_s22, %s717_s12, %s717_s12, %s718_s25  }
 0x255 PF: > { %s475_s29 = sand.u32 1, %s700_s18   ;;  %p952_p7 = scmp.ge.s32.totalorder %s712_s21, 2 }
 0x256   : > { %s476_s13 = scalar_lea.sflag [#allocation4], %s475_s29 }
 0x257   : > { %p562_p5 = pnand %p952_p7, %p803_p12 }
 0x259   : > { %p563_p8 = pneg %p562_p5 }
 0x25b   : > { %695 = dma.done.wait (%p563_p8), %s476_s13, 1024  }
 0x25c   : > { %697 = vsyncadd (%p563_p8), %s476_s13, 4294966272  ;;  %p18_p10 = scmp.ge.s32.totalorder %s774_s24, 4   ;;  %s953_s18 = smov %s704_s19 }
 0x25d   : > { %s954_s19 = smov %s708_s20  ;;  %s955_s20 = smov %s786_s27 }
 0x25e   : > { %s956_s21 = smov %s774_s24  ;;  %20 = sbr.rel (!%p18_p10) target bundleno = 5 (0x5), region = 85 }
 0x263   :  { %482 = vsyncpa [#allocation3], 1 }
 0x264   :  { %484 = vsyncpa [#allocation3 + $0x1], 1 }
 0x265   :  { %485 = vsyncpa [#allocation4], 1 }
 0x266   :  { %487 = vsyncpa [#allocation4 + $0x1], 1 }

</bundles_post_ra>
